<compile_context>
chip_gen: v7x
topology: tpu7x:2x2x1
jax: 0.10.0
libtpu: 0.0.40
codegen_flags: <defaults>
</compile_context>

<pallas_src>
import functools

import jax
import jax.numpy as jnp
from jax.experimental import pallas as pl
from jax.experimental.pallas import tpu as pltpu

LANE = 128  # TPU lane width; the points axis (last dim) is tiled by this.


def _round_up(x, m):
    return ((x + m - 1) // m) * m


def _fused_mlpconv_kernel(*refs, n_layers, compute_dtype):
    """refs = (x_ref, w0, b0, w1, b1, ..., o_ref).

    x_ref block: (1, C_in, N_TILE)   channels on sublanes, points on lanes
    w_i  block:  (C_out_i, C_in_i)   full array, VMEM-resident
    b_i  block:  (C_out_i, 1)        f32, broadcasts over the N lanes
    o_ref block: (1, C_out_last, N_TILE)

    The whole layer stack is chained in vregs/VMEM; intermediate activations
    never touch HBM.
    """
    x_ref = refs[0]
    o_ref = refs[-1]
    h = x_ref[0]                                        # (C_in, N_TILE)
    for i in range(n_layers):
        w = refs[1 + 2 * i][...].astype(compute_dtype)  # (C_out, C_in)
        b = refs[2 + 2 * i][...]                        # (C_out, 1), f32
        y = jnp.dot(w, h.astype(compute_dtype),
                    preferred_element_type=jnp.float32)  # (C_out, N_TILE) f32
        y = y + b
        if i != n_layers - 1:
            y = jnp.maximum(y, 0.0)
        h = y
    o_ref[0] = h.astype(o_ref.dtype)


def mlpconv_pallas(x, params, *, n_tile=None, compute_dtype=jnp.bfloat16):
    """Fused MLPConv (1x1 Conv1d stack) forward.

    x:      [B, C_in, N]  channel-first Conv1d layout (kept as-is, no transposes)
    params: list of (w [C_out_l, C_in_l], b [C_out_l, 1]) per layer,
            as produced by init_mlpconv_params (weights already in bf16).
    returns [B, C_out_last, N] float32
    """
    B, C_in, N = x.shape
    n_layers = len(params)
    dims = [C_in] + [w.shape[0] for (w, _) in params]

    if n_tile is None:
        n_tile = min(1024, _round_up(N, LANE))
    else:
        n_tile = _round_up(n_tile, LANE)
    grid = (B, pl.cdiv(N, n_tile))

    in_specs = [pl.BlockSpec((1, C_in, n_tile), lambda b, n: (b, 0, n))]
    flat_params = []
    for li, (w, bias) in enumerate(params):
        c_in_l, c_out_l = dims[li], dims[li + 1]
        flat_params += [w, bias]
        # Full-array blocks with a constant index_map -> loaded once, resident
        # in VMEM for the whole grid.
        in_specs.append(pl.BlockSpec((c_out_l, c_in_l), lambda b, n: (0, 0)))
        in_specs.append(pl.BlockSpec((c_out_l, 1), lambda b, n: (0, 0)))
    out_spec = pl.BlockSpec((1, dims[-1], n_tile), lambda b, n: (b, 0, n))

    flops = 2 * B * N * sum(dims[i] * dims[i + 1] for i in range(n_layers))
    bytes_accessed = (x.size * x.dtype.itemsize
                      + sum(p.size * p.dtype.itemsize for p in flat_params)
                      + B * dims[-1] * N * 4)

    kernel = functools.partial(_fused_mlpconv_kernel, n_layers=n_layers,
                               compute_dtype=compute_dtype)
    return pl.pallas_call(
        kernel,
        out_shape=jax.ShapeDtypeStruct((B, dims[-1], N), jnp.float32),
        grid_spec=pl.GridSpec(grid=grid, in_specs=in_specs, out_specs=out_spec),
        compiler_params=pltpu.CompilerParams(
            dimension_semantics=("parallel", "parallel"),
            vmem_limit_bytes=32 * 1024 * 1024),
        cost_estimate=pl.CostEstimate(flops=flops, transcendentals=0,
                                      bytes_accessed=bytes_accessed),
    )(x, *flat_params)


def init_mlpconv_params(key, dims, *, weight_dtype=jnp.bfloat16):
    """Mimics nn.Conv1d(kernel_size=1) default init: uniform +/- 1/sqrt(fan_in).

    Prepared once in the kernel's layout: w [C_out, C_in] (PyTorch's [out, in, 1]
    squeezed) cast to bf16, b [C_out, 1] kept in f32 — no per-call re-prep.
    """
    params = []
    for i in range(len(dims) - 1):
        fan_in, fan_out = dims[i], dims[i + 1]
        key, kw, kb = jax.random.split(key, 3)
        bound = 1.0 / (fan_in ** 0.5)
        w = jax.random.uniform(kw, (fan_out, fan_in), jnp.float32, -bound, bound)
        b = jax.random.uniform(kb, (fan_out, 1), jnp.float32, -bound, bound)
        params.append((w.astype(weight_dtype), b))
    return params


if __name__ == "__main__":
    key = jax.random.PRNGKey(0)

    # Discriminator(num_points=256, divide_ratio=2):
    #   patch_mlp_conv = MLPConv([64//2 + 128//2 + 128//2, 1]) = MLPConv([160, 1])
    # operating on l1_points of shape [B, 160, num_points].
    divide_ratio = 2
    num_points = 256
    batch = 2
    c_in = 64 // divide_ratio + 128 // divide_ratio + 128 // divide_ratio  # 160
    dims = [c_in, 1]

    # Synthesized stand-in for PointnetSAModuleMSG's l1_points output.
    key, kx = jax.random.split(key)
    l1_points = jax.random.normal(kx, (batch, c_in, num_points), jnp.float32)
    # Feed activations in bf16: halves the dominant HBM read stream; the kernel
    # accumulates in f32.
    l1_points_bf16 = l1_points.astype(jnp.bfloat16)

    params = init_mlpconv_params(key, dims)

    fwd = jax.jit(mlpconv_pallas)
    patch_values = fwd(l1_points_bf16, params)
    patch_values = jax.block_until_ready(patch_values)

    # Pure-JAX reference on the same bf16-rounded operands, f32 accumulation.
    ref = l1_points_bf16.astype(jnp.float32)
    for i, (w, b) in enumerate(params):
        ref = jnp.einsum("bcn,oc->bon", ref, w.astype(jnp.float32),
                         precision=jax.lax.Precision.HIGHEST) + b[None, :, :]
        if i != len(params) - 1:
            ref = jnp.maximum(ref, 0.0)

    assert patch_values.shape == (batch, dims[-1], num_points)
    assert patch_values.dtype == jnp.float32
    assert jnp.allclose(patch_values, ref, atol=2e-3, rtol=2e-3)

    print("KERNEL_OK")
</pallas_src>

<mosaic_0001>
module attributes {stable_mosaic.version = 11 : i64} {
  func.func @_fused_mlpconv_kernel(%arg0: i32, %arg1: i32, %arg2: memref<1x160x256xbf16, #tpu.memory_space<vmem>>, %arg3: memref<1x160xbf16, #tpu.memory_space<vmem>>, %arg4: memref<1x1xf32, #tpu.memory_space<vmem>>, %arg5: memref<1x1x256xf32, #tpu.memory_space<vmem>>) attributes {dimension_semantics = [#tpu.dimension_semantics<parallel>, #tpu.dimension_semantics<parallel>], iteration_bounds = array<i64: 2, 1>, scalar_prefetch = 0 : i64, scratch_operands = 0 : i64, tpu.core_type = #tpu.core_type<tc>, window_params = [{transform_indices = @transform_0, window_bounds = array<i64: 1, 160, 256>}, {pipeline_mode = #tpu.pipeline_mode<synchronous>, transform_indices = @transform_1, window_bounds = array<i64: 1, 160>}, {pipeline_mode = #tpu.pipeline_mode<synchronous>, transform_indices = @transform_2, window_bounds = array<i64: 1, 1>}, {transform_indices = @transform_3, window_bounds = array<i64: 1, 1, 256>}]} {
    %c0 = arith.constant 0 : index
    %c0_0 = arith.constant 0 : index
    %c0_1 = arith.constant 0 : index
    %0 = vector.load %arg2[%c0, %c0_0, %c0_1] : memref<1x160x256xbf16, #tpu.memory_space<vmem>>, vector<1x160x256xbf16>
    %1 = vector.shape_cast %0 : vector<1x160x256xbf16> to vector<160x256xbf16>
    %c0_2 = arith.constant 0 : index
    %c0_3 = arith.constant 0 : index
    %2 = vector.load %arg3[%c0_2, %c0_3] : memref<1x160xbf16, #tpu.memory_space<vmem>>, vector<1x160xbf16>
    %c0_4 = arith.constant 0 : index
    %c0_5 = arith.constant 0 : index
    %3 = vector.load %arg4[%c0_4, %c0_5] : memref<1x1xf32, #tpu.memory_space<vmem>>, vector<1x1xf32>
    %cst = arith.constant dense<0.000000e+00> : vector<1x256xf32>
    %4 = tpu.matmul %2, %1, %cst {dimension_numbers = #tpu.dot_dimension_numbers<[1], [0], [0], [1], [0, 0, 1, 1], [], []>} : vector<1x160xbf16>, vector<160x256xbf16>, vector<1x256xf32> -> vector<1x256xf32>
    %5 = vector.broadcast %3 : vector<1x1xf32> to vector<1x256xf32>
    %6 = arith.addf %4, %5 : vector<1x256xf32>
    %c0_6 = arith.constant 0 : index
    %c0_7 = arith.constant 0 : index
    %c0_8 = arith.constant 0 : index
    %7 = vector.load %arg5[%c0_6, %c0_7, %c0_8] : memref<1x1x256xf32, #tpu.memory_space<vmem>>, vector<1x1x256xf32>
    %8 = vector.shape_cast %7 : vector<1x1x256xf32> to vector<1x256xf32>
    %9 = vector.shape_cast %6 : vector<1x256xf32> to vector<1x1x256xf32>
    tpu.vector_store %arg5[%c0_6, %c0_7, %c0_8], %9 {strides = array<i32>} : memref<1x1x256xf32, #tpu.memory_space<vmem>>, vector<1x1x256xf32>,
    return
  }
  func.func @transform_0(%arg0: i32, %arg1: i32) -> (i32, i32, i32) {
    %c0_i32 = arith.constant 0 : i32
    %c0_i32_0 = arith.constant 0 : i32
    return %arg0, %c0_i32, %arg1 : i32, i32, i32
  }
  func.func @transform_1(%arg0: i32, %arg1: i32) -> (i32, i32) {
    %c0_i32 = arith.constant 0 : i32
    %c0_i32_0 = arith.constant 0 : i32
    %c0_i32_1 = arith.constant 0 : i32
    return %c0_i32, %c0_i32_0 : i32, i32
  }
  func.func @transform_2(%arg0: i32, %arg1: i32) -> (i32, i32) {
    %c0_i32 = arith.constant 0 : i32
    %c0_i32_0 = arith.constant 0 : i32
    %c0_i32_1 = arith.constant 0 : i32
    return %c0_i32, %c0_i32_0 : i32, i32
  }
  func.func @transform_3(%arg0: i32, %arg1: i32) -> (i32, i32, i32) {
    %c0_i32 = arith.constant 0 : i32
    %c0_i32_0 = arith.constant 0 : i32
    return %arg0, %c0_i32, %arg1 : i32, i32, i32
  }
}

</mosaic_0001>

<bundles_post_ra>
// kernel: mlpconv_pallas.1
= control target key start
LH: loop header
LB: loop body
LE: loop exit
PB: predicated region body
PF: predicated region fallthrough
CT: control target
= control target key end

     0   :  { %s1013_s0 = inlined_call_operand.hbm [shape: bf16[2,160,256], index: 0, kind: input, shape index: {}]   ;;  %s1014_s1 = inlined_call_operand.vmem [shape: bf16[1,160], index: 1, kind: input, shape index: {}]   ;;  %s1015_s2 = inlined_call_operand.<no memory space> [shape: f32[1,1], index: 2, kind: input, shape index: {}]   ;;  %s1016_s3 = inlined_call_operand.hbm [shape: f32[2,1,256], index: 3, kind: output, shape index: {}]  }
   0x1   :  { %v8_v0 = vstv %s1015_s2 }
   0x2   :  { %9 = vst [vmem:[#allocation2] sm:$0x1] %v8_v0 }
   0x3   :  { %10 = vsyncpa [#allocation4], 0 }
   0x4   :  { %12 = vsyncpa [#allocation4 + $0x1], 0 }
   0x5   :  { %13 = vsyncpa [#allocation5], 0 }
   0x6   :  { %15 = vsyncpa [#allocation5 + $0x1], 0  ;;  %s814_s14 = smov 0   ;;  %s816_s15 = smov 0  }
   0x7   :  { %s818_s16 = smov 0   ;;  %s820_s17 = smov 0  }
   0x8   :  { %s822_s18 = smov 0   ;;  %s824_s19 = smov 0  }
   0x9 LB: > { %s536_s2 = sadd.s32 4294967295, %s783_s19   ;;  %s537_s20 = sadd.s32 4294967294, %s783_s19   ;;  %s783_s19 = sphi %s824_s19, %s21_s19   ;;  %s779_s18 = sphi %s822_s18, %s1031_s18   ;;  %s775_s17 = sphi %s820_s17, %s1030_s17   ;;  %s771_s16 = sphi %s818_s16, %s1029_s16   ;;  %s767_s15 = sphi %s816_s15, %s1028_s15   ;;  %s763_s14 = sphi %s814_s14, %s1027_s14  }
   0xa   : > { %s33_s21 = sadd.s32 1, %s779_s18  ;;  %s42_s22 = sadd.s32 1, %s771_s16 }
   0xb   : > { %p35_p0 = scmp.ge.s32.totalorder %s33_s21, 2  ;;  %p49_p1 = scmp.ne.s32.totalorder %s771_s16, %s767_s15 }
   0xc   : > { %p50_p2 = scmp.eq.s32.totalorder %s783_s19, 0  ;;  %p55_p3 = scmp.ne.s32.totalorder %s767_s15, %s763_s14 }
   0xd   : > { %s1033_s21 = smov (%p35_p0, %s33_s21), 0  ;;  %p56_p5 = scmp.eq.s32.totalorder %s536_s2, 0 }
   0xe   : > { %p855_p4 = por %p50_p2, %p49_p1  ;;  %s37_s24 = ssub.s32 %s779_s18, %s1033_s21 }
   0xf   : > { %p123_p6 = scmp.eq.s32.totalorder %s536_s2, 1  ;;  %p40_p7 = scmp.eq.s32.totalorder %s37_s24, 0 }
  0x10   : > { %p861_p8 = por %p56_p5, %p55_p3  ;;  %p129_p10 = scmp.eq.s32.totalorder %s537_s20, 1 }
  0x11   : > { %p865_p9 = por %p123_p6, %p49_p1  ;;  %p586_p13 = scmp.lt.s32.totalorder %s783_s19, 2 }
  0x12   : > { %s870_s27 = scalar_select %p40_p7, %s771_s16, %s42_s22  }
  0x13   : > { %s1020_s26 = scalar_select %p865_p9, 1, 0 }
  0x14   : > { %p872_p11 = por %p129_p10, %p55_p3  ;;  %s155_s29 = sand.u32 1, %s771_s16  }
  0x15   : > { %s571_s30 = smul.u32 160, %s155_s29  ;;  %p882_p0 = pnand %p586_p13, %p855_p4 }
  0x16   : > { %s1021_s28 = scalar_select %p872_p11, 1, 0 }
  0x17   : > { %s572_s4 = smul.u32 2560, %s779_s18  ;;  %s159_s9 = scalar_lea.vmem [#allocation3], %s571_s30 }
  0x18   : > { %s168_s10 = sshll.u32 %s159_s9, 4  ;;  %s894_s11 = scalar_lea.sflag [#allocation4], %s155_s29  ;;  %s891_s10 = int_to_ptr.vmem [resolvable:$true] %s168_s10 }
  0x19   : > { %s889_s8 = scalar_lea.hbm %s1013_s0, %s572_s4  ;;  %p673_p3 = pneg %p882_p0 }
  0x1a   : > { %s671_s12 = scalar_lea.hbm %s889_s8, 2560  ;;  %s676_s20 = scalar_lea.hbm %s1013_s0, 5120 }
  0x1b   : > { %p672_p2 = scmp.ne.s32.totalorder %s889_s8, %s671_s12  ;;  %p677_p6 = scmp.lt.u32.totalorder %s889_s8, %s1013_s0 }
  0x1c   : > { %p678_p7 = scmp.lt.u32.totalorder %s676_s20, %s671_s12  ;;  %p680_p13 = scmp.lt.u32.totalorder %s671_s12, %s889_s8 }
  0x1d   : > { %p674_p4 = pnand %p673_p3, %p672_p2 }
  0x1e   : > { %p679_p10 = por %p678_p7, %p677_p6 }
  0x1f   : > { %p675_p5 = pneg %p674_p4 }
  0x20   : > { %p681_p12 = por %p680_p13, %p679_p10 }
  0x22   : > { %p682_p1 = pnand %p681_p12, %p675_p5 }
  0x24   : > { %685 = shalt.err (!%p682_p1)
}
  0x25   : > { %s686_s24 = scalar_lea.vmem %s891_s10, 2560  ;;  %s785_s29 = smov [#allocation3]  }
  0x26   : > { %p687_p2 = scmp.ne.s32.totalorder %s891_s10, %s686_s24  ;;  %s691_s30 = sshll.u32 %s785_s29, 4  ;;  %s692_s30 = int_to_ptr.vmem [resolvable:$false] %s691_s30 }
  0x27   : > { %s693_s4 = scalar_lea.vmem %s692_s30, 5120  ;;  %p694_p9 = scmp.lt.s32.totalorder %s891_s10, %s692_s30 }
  0x28   : > { %p689_p4 = pnand %p687_p2, %p673_p3  ;;  %p695_p6 = scmp.lt.s32.totalorder %s693_s4, %s686_s24 }
  0x2a   : > { %p690_p11 = pneg %p689_p4  ;;  %p696_p7 = por %p695_p6, %p694_p9 }
  0x2c   : > { %p697_p10 = pnand %p696_p7, %p690_p11 }
  0x2e   : > { %700 = shalt.err (!%p697_p10)
}
  0x2f   : > { %s786_s6 = smov 128   ;;  %s787_s7 = smov 8  }
  0x30   : > { %581 = dma.hbm_to_vmem [thread:$0]  (!%p882_p0), %s889_s8, 2560, %s891_s10, %s894_s11, %s786_s6, %s786_s6, %s787_s7  }
  0x31   : > { %p176_p12 = scmp.lt.s32.totalorder %s783_s19, 3  ;;  %p1023_p1 = scmp.ge.s32.totalorder %s783_s19, 1 }
  0x33   : > { %p177_p3 = pnand %p1023_p1, %p176_p12 }
  0x34   : > { %s926_s9 = sand.u32 (!%p177_p3), 1, %s767_s15  }
  0x35   : > { %180 = sbr.rel (%p177_p3) target bundleno = 337 (0x151), region = 32  ;;  %s183_s13 = scalar_lea.sflag (!%p177_p3), [#allocation4], %s926_s9 }
  0x36   : > { %s573_s12 = smul.u32 (!%p177_p3), 160, %s926_s9 }
  0x38   : > { %s930_s2 = scalar_lea.vmem (!%p177_p3), [#allocation3], %s573_s12 }
  0x3c   : > { %754 = dma.done.wait (%p861_p8), %s183_s13, 2560  }
  0x3d   : > { %756 = vsyncadd (%p861_p8), %s183_s13, 4294964736  ;;  %v788_v1 = vmov 0   ;;  %v641_v2 = vld [vmem:[%s930_s2 + $0x4] ss:$8 sps:$4 sm:$0xff]   ;;  %v643_v3 = vld [vmem:[%s930_s2] ss:$8 sps:$4 sm:$0xff]   ;;  %v239_v7 = vlaneseq }
  0x3e   : > { %640 = vset.pattern.permute.xlu0 %v788_v1  ;;  %371 = vmatprep.subr.bf16.mxu0 %v641_v2  ;;  %v644_v4 = vld [vmem:[%s930_s2 + $0x14] ss:$8 sps:$4 sm:$0xff]   ;;  %v646_v5 = vld [vmem:[%s930_s2 + $0x10] ss:$8 sps:$4 sm:$0xff]   ;;  %v647_v6 = vld [vmem:[%s930_s2 + $0x24] ss:$8 sps:$4 sm:$0xff]  }
  0x3f   : > { %372 = vmatpush1.bf16.msra.mxu0 %v643_v3  ;;  %v789_v8 = vmov 1966171168   ;;  %v649_v10 = vld [vmem:[%s930_s2 + $0x20] ss:$8 sps:$4 sm:$0xff]   ;;  %v650_v11 = vld [vmem:[%s930_s2 + $0x34] ss:$8 sps:$4 sm:$0xff]  }
  0x40   : > { %373 = vmatprep.subr.bf16.mxu0 %v644_v4  ;;  %v253_v9 = vunpack.c.l.s4 %v789_v8  ;;  %v240_v12 = vshrl.u32 %v239_v7, 7  ;;  %v652_v14 = vld [vmem:[%s930_s2 + $0x30] ss:$8 sps:$4 sm:$0xff]   ;;  %v653_v15 = vld [vmem:[%s930_s2 + $0x44] ss:$8 sps:$4 sm:$0xff]   ;;  %vm367_vm0 = vcmask 261120  }
  0x41   : > { %v543_v17 = vld.sshfl [vmem:[%s1014_s1] sm:$0x11 pattern:$0x75316420]  ;;  %v658_v23 = vld [vmem:[%s930_s2 + $0x50] ss:$8 sps:$4 sm:$0xff]  }
  0x42   : > { %v254_v13 = vunpack.c.0.s8 %v253_v9  ;;  %v251_v18 = vcombine.high %v543_v17, %v543_v17  ;;  %v233_v19 = vld [vmem:[#allocation2] sm:$0x1]  ;;  %v655_v20 = vld [vmem:[%s930_s2 + $0x40] ss:$8 sps:$4 sm:$0xff]   ;;  %v659_v24 = vld [vmem:[%s930_s2 + $0x64] ss:$8 sps:$4 sm:$0xff]  }
  0x43   : > { %374 = vmatpush1.bf16.msra.mxu0 %v646_v5  ;;  %236 = vperm.xlu0 %640, %v233_v19   ;;  %v656_v21 = vld [vmem:[%s930_s2 + $0x54] ss:$8 sps:$4 sm:$0xff]   ;;  %v661_v25 = vld [vmem:[%s930_s2 + $0x60] ss:$8 sps:$4 sm:$0xff]   ;;  %v664_v27 = vld [vmem:[%s930_s2 + $0x70] ss:$8 sps:$4 sm:$0xff]  }
  0x44   : > { %375 = vmatprep.subr.bf16.mxu0 %v647_v6  ;;  %v257_v16 = vsub.s32 %v254_v13, %v240_v12  ;;  %v662_v26 = vld [vmem:[%s930_s2 + $0x74] ss:$8 sps:$4 sm:$0xff]   ;;  %v665_v28 = vld [vmem:[%s930_s2 + $0x84] ss:$8 sps:$4 sm:$0xff]   ;;  %v667_v29 = vld [vmem:[%s930_s2 + $0x80] ss:$8 sps:$4 sm:$0xff]  }
  0x45   : > { %v668_v30 = vld [vmem:[%s930_s2 + $0x94] ss:$8 sps:$4 sm:$0xff]   ;;  %v670_v31 = vld [vmem:[%s930_s2 + $0x90] ss:$8 sps:$4 sm:$0xff]   ;;  %v241_v33 = vsub.s32 0, %v240_v12  ;;  %s542_s8 = sshll.u32 %s926_s9, 1 }
  0x46   : > { %v265_v22 = vrot.slane %v251_v18, %v257_v16  ;;  %v258_v32 = vrot.slane %v543_v17, %v257_v16  ;;  %s570_s10 = sshll.u32 %s775_s17, 5  ;;  %s208_s11 = scalar_lea.vmem [#allocation6], %s542_s8  ;;  %vm432_vm1 = vcmp.lt.s32.totalorder %v239_v7, 256 }
  0x47   : > { %376 = vmatpush1.bf16.msra.mxu0 %v649_v10  ;;  %s452_s20 = sshll.u32 %s208_s11, 4  ;;  %s964_s24 = scalar_lea.hbm %s1016_s3, %s570_s10  ;;  %s966_s20 = int_to_ptr.vmem [resolvable:$true] %s452_s20 }
  0x48   : > { %377 = vmatprep.subr.bf16.mxu0 %v650_v11  ;;  %564 = vmatprep.mubr.msk.bf16.mxu0 %vm367_vm0, %v265_v22  ;;  %s436_s29 = scalar_lea.sflag [#allocation5], %s926_s9  ;;  %s701_s30 = scalar_lea.vmem %s966_s20, 32 }
  0x49   : > { %p702_p8 = scmp.ne.s32.totalorder %s966_s20, %s701_s30  ;;  %p1024_p9 = scmp.ne.s32.totalorder %s1020_s26, 0 }
  0x4a   : > { %s790_s17 = smov [#allocation6]  }
  0x4b   : > { %378 = vmatpush1.bf16.msra.mxu0 %v652_v14  ;;  %p703_p11 = pnand %p702_p8, %p1024_p9  ;;  %s705_s4 = sshll.u32 %s790_s17, 4  ;;  %s706_s4 = int_to_ptr.vmem [resolvable:$false] %s705_s4 }
  0x4c   : > { %379 = vmatprep.subr.bf16.mxu0 %v653_v15  ;;  %s707_s6 = scalar_lea.vmem %s706_s4, 64  ;;  %p708_p5 = scmp.lt.s32.totalorder %s966_s20, %s706_s4 }
  0x4d   : > { %p704_p0 = pneg %p703_p11  ;;  %p709_p13 = scmp.lt.s32.totalorder %s707_s6, %s701_s30 }
  0x4f   : > { %380 = vmatpush1.bf16.msra.mxu0 %v655_v20  ;;  %p710_p2 = por %p709_p13, %p708_p5 }
  0x50   : > { %381 = vmatprep.subr.bf16.mxu0 %v656_v21 }
  0x51   : > { %p711_p4 = pnand %p710_p2, %p704_p0 }
  0x53   : > { %382 = vmatpush1.bf16.msra.mxu0 %v658_v23 }
  0x54   : > { %383 = vmatprep.subr.bf16.mxu0 %v659_v24 }
  0x57   : > { %384 = vmatpush1.bf16.msra.mxu0 %v661_v25 }
  0x58   : > { %385 = vmatprep.subr.bf16.mxu0 %v662_v26 }
  0x5b   : > { %386 = vmatpush1.bf16.msra.mxu0 %v664_v27 }
  0x5c   : > { %387 = vmatprep.subr.bf16.mxu0 %v665_v28 }
  0x5f   : > { %388 = vmatpush1.bf16.msra.mxu0 %v667_v29 }
  0x60   : > { %389 = vmatprep.subr.bf16.mxu0 %v668_v30 }
  0x63   : > { %390 = vmatpush1.bf16.msra.mxu0 %v670_v31 }
  0x66   : > { %404 = vmatmul.mubr.bf16.vlgmr.msra.gmra.mrb[0].mxu0 %v258_v32 }
  0xc2   : > { %v237_v34 = vpop.permute.xlu0 %236 }
  0xc3   : > { %v242_v35 = vrot.slane %v237_v34, %v241_v33 }
 0x139   : > { %v405_v36 = vpop.f32.mrb[0].mxu0 }
 0x13a   : > { %v406_v37 = vadd.f32 %v405_v36, %v242_v35  ;;  %v407_v38 = vpop.f32.mrb[1].mxu0 }
 0x13b   : > { %v408_v39 = vadd.f32 %v407_v38, %v242_v35  ;;  %v409_v40 = vpop.f32.mrb[2].mxu0 }
 0x13c   : > { %v410_v41 = vpop.f32.mrb[3].mxu0 }
 0x13d   : > { %v414_v42 = vcombine.low %v406_v37, %v408_v39 }
 0x13f   : > { %v421_v43 = vrot.slane %v414_v42, %v257_v16 }
 0x141   : > { %v428_v44 = vrot.slane %v421_v43, %v257_v16 }
 0x143   : > { %434 = vst.msk [vmem:[%s208_s11] sm:$0x3] %vm432_vm1, %v428_v44 }
 0x144   : > { %714 = shalt.err (!%p711_p4)
}
 0x145   : > { %s715_s7 = scalar_lea.hbm %s964_s24, 32  ;;  %s719_s13 = scalar_lea.hbm %s1016_s3, 64 }
 0x146   : > { %p716_p6 = scmp.ne.s32.totalorder %s964_s24, %s715_s7  ;;  %p720_p12 = scmp.lt.u32.totalorder %s964_s24, %s1016_s3 }
 0x147   : > { %p721_p1 = scmp.lt.u32.totalorder %s719_s13, %s715_s7  ;;  %p723_p8 = scmp.lt.u32.totalorder %s715_s7, %s964_s24 }
 0x148   : > { %p717_p7 = pnand %p716_p6, %p1024_p9 }
 0x149   : > { %p722_p3 = por %p721_p1, %p720_p12 }
 0x14a   : > { %p718_p10 = pneg %p717_p7 }
 0x14b   : > { %p724_p11 = por %p723_p8, %p722_p3 }
 0x14d   : > { %p725_p0 = pnand %p724_p11, %p718_p10 }
 0x14f   : > { %728 = shalt.err (!%p725_p0)
}
 0x150   : > { %576 = dma.vmem_to_hbm [thread:$0]  (%p1024_p9), %s966_s20, 32, %s964_s24, %s436_s29  }
 0x151 PF: > { %s464_s5 = sand.u32 1, %s763_s14   ;;  %p1025_p5 = scmp.ne.s32.totalorder %s1021_s28, 0 }
 0x152   : > { %p1026_p13 = scmp.ge.s32.totalorder %s783_s19, 2  ;;  %s465_s8 = scalar_lea.sflag [#allocation5], %s464_s5 }
 0x154   : > { %p583_p2 = pnand %p1026_p13, %p1025_p5 }
 0x156   : > { %758 = dma.done.wait (!%p583_p2), %s465_s8, 32  }
 0x157   : > { %760 = vsyncadd (!%p583_p2), %s465_s8, 4294967264  ;;  %s21_s19 = sadd.s32 1, %s783_s19   ;;  %s1027_s14 = smov %s767_s15 }
 0x158   : > { %p18_p4 = scmp.ge.s32.totalorder %s21_s19, 4   ;;  %s1028_s15 = smov %s771_s16 }
 0x159   : > { %s1029_s16 = smov %s870_s27  ;;  %s1030_s17 = smov %s779_s18 }
 0x15a   : > { %s1031_s18 = smov %s1033_s21  ;;  %20 = sbr.rel (!%p18_p4) target bundleno = 9 (0x9), region = 77 }
 0x161   :  { %470 = vsyncpa [#allocation4], 1 }
 0x162   :  { %472 = vsyncpa [#allocation4 + $0x1], 1 }
 0x163   :  { %473 = vsyncpa [#allocation5], 1 }
 0x164   :  { %475 = vsyncpa [#allocation5 + $0x1], 1 }

</bundles_post_ra>
